<compile_context>
chip_gen: v7x
topology: tpu7x:2x2x1
jax: 0.10.0
libtpu: 0.0.40
codegen_flags: <defaults>
</compile_context>

<pallas_src>
import functools

import jax
import jax.numpy as jnp
from jax import lax
from jax.experimental import pallas as pl
from jax.experimental.pallas import tpu as pltpu

BN_EPS = 1e-5
ELU_ALPHA = 1.0


def _round_up(x, m):
    return ((x + m - 1) // m) * m


def _cdiv(a, b):
    return -(-a // b)


def _pooling_kernel(x_ref, ids_ref, scale_ref, shift_ref, out_ref, cnt_ref, *,
                    n_total, tn, s_pad, ragged_n):
    """One (F-tile, N-tile) grid step.

    Grid = (F tiles [parallel], N tiles [arbitrary / reduction, innermost]).
      x_ref     : [TN, TF]    f32   node features (tile, possibly partial)
      ids_ref   : [1, TN]     int32 segment ids (padded rows carry id == s_pad)
      scale_ref : [1, TF]     f32   folded BN scale
      shift_ref : [1, TF]     f32   folded BN shift
      out_ref   : [S_pad, TF] f32   pooled output block (resident accumulator)
      cnt_ref   : [S_pad, 1]  f32   segment counts (VMEM scratch)
    """
    k = pl.program_id(1)  # position along the N (reduction) axis

    @pl.when(k == 0)
    def _init():
        out_ref[...] = jnp.zeros_like(out_ref)
        cnt_ref[...] = jnp.zeros_like(cnt_ref)

    # ---- BatchNorm1d (eval) folded to scale/shift, then ELU (f32, VPU+EUP) ----
    x_bn = x_ref[...] * scale_ref[...] + shift_ref[...]
    # exp(x)-1 kept (guaranteed Mosaic lowering); f32 abs error vs expm1 ~1e-7.
    x_act = jnp.where(x_bn > 0, x_bn, ELU_ALPHA * (jnp.exp(x_bn) - 1.0))

    if ragged_n:
        # Last N tile is partial: zero garbage rows so 0*NaN/Inf from the
        # undefined part of the block cannot poison the MXU accumulation.
        # (Padded ids already keep those rows out of one_hot / the counts.)
        row = lax.broadcasted_iota(jnp.int32, (tn, 1), 0) + k * tn
        x_act = jnp.where(row < n_total, x_act, 0.0)

    # ---- per-N-tile one-hot [S_pad, TN]; padded ids (== s_pad) never match ----
    ids = ids_ref[...]                                          # [1, TN]
    seg_iota = lax.broadcasted_iota(jnp.int32, (s_pad, tn), 0)
    one_hot = (seg_iota == ids).astype(jnp.float32)

    # ---- segment sums straight into the resident output block (f32 MXU) ----
    out_ref[...] += jnp.dot(one_hot, x_act, preferred_element_type=jnp.float32)

    # ---- exact per-segment counts (XLU reduction; hides under the matmul).
    # Recomputed for every F tile so megacore sharding of the parallel axis
    # stays correct (each core re-derives its own counts).
    cnt_ref[...] += jnp.sum(one_hot, axis=1, keepdims=True)

    # ---- finalize once per F tile: exact divide, single masked store ----
    @pl.when(k == pl.num_programs(1) - 1)
    def _finalize():
        out_ref[...] = (out_ref[...] /
                        jnp.maximum(cnt_ref[...], 1.0)).astype(out_ref.dtype)


def pooling_forward(x, ids, gamma, beta, running_mean, running_var, num_seg,
                    *, tile_n=2048, tile_f=512, interpret=False):
    """x: [N, F] f32, ids: [N] int -> [num_seg, F] f32 (scatter_mean of ELU(BN(x)))."""
    n, f = x.shape
    x = x.astype(jnp.float32)

    # Fold BatchNorm1d (eval mode) into one scale/shift per feature.
    scale = (gamma.astype(jnp.float32)
             * lax.rsqrt(running_var.astype(jnp.float32) + BN_EPS))
    shift = beta.astype(jnp.float32) - running_mean.astype(jnp.float32) * scale

    s_pad = _round_up(max(num_seg, 1), 8)          # segments -> sublane multiple

    # ---- tile selection; x itself is never copied or padded ----------------
    if n <= tile_n:
        tn, grid_n = n, 1                          # full-extent N block
    else:
        tn = max(128, (tile_n // 128) * 128)       # multiple of 128 (ids lane dim)
        grid_n = _cdiv(n, tn)
    ragged_n = (grid_n * tn != n)

    if f <= 128 or _round_up(min(tile_f, f), 128) >= f:
        tf, grid_f = f, 1                          # single full-width F tile
    else:
        tf = max(128, (min(tile_f, f) // 128) * 128)
        grid_f = _cdiv(f, tf)

    # ids are tiny: pad (only them) with the out-of-range value s_pad so padded
    # rows never match any one-hot row and never enter the counts.
    ids32 = ids.astype(jnp.int32)
    n_ids = grid_n * tn
    if n_ids == n:
        ids_row = ids32.reshape(1, n)
    else:
        ids_row = jnp.full((1, n_ids), s_pad, jnp.int32).at[0, :n].set(ids32)

    scale_row = scale.reshape(1, f)
    shift_row = shift.reshape(1, f)

    grid = (grid_f, grid_n)    # (parallel F tiles, reduction N tiles last)

    kernel = functools.partial(_pooling_kernel, n_total=n, tn=tn,
                               s_pad=s_pad, ragged_n=ragged_n)

    # Rough VMEM budget: double-buffered x + resident out + temporaries.
    est = (2 * tn * tf * 4            # x blocks (double-buffered)
           + 2 * s_pad * tf * 4       # out block(s)
           + s_pad * 128 * 4          # counts scratch (lane padded)
           + 3 * tn * tf * 4          # x_bn / x_act / mask temporaries
           + s_pad * tn * 4           # one-hot temporary
           + 4 * (2 * tn + 4 * tf))   # ids / scale / shift blocks
    # Cap below physical VMEM on v7x (64 MiB/TC) to leave compiler headroom.
    vmem_limit = int(min(max(2 * est, 16 * 1024 * 1024), 48 * 1024 * 1024))

    out_padded = pl.pallas_call(
        kernel,
        out_shape=jax.ShapeDtypeStruct((s_pad, f), jnp.float32),
        grid_spec=pltpu.PrefetchScalarGridSpec(
            num_scalar_prefetch=0,
            grid=grid,
            in_specs=[
                pl.BlockSpec((tn, tf), lambda j, k: (k, j)),    # x
                pl.BlockSpec((1, tn), lambda j, k: (0, k)),     # ids
                pl.BlockSpec((1, tf), lambda j, k: (0, j)),     # scale
                pl.BlockSpec((1, tf), lambda j, k: (0, j)),     # shift
            ],
            out_specs=pl.BlockSpec((s_pad, tf), lambda j, k: (0, j)),
            scratch_shapes=[
                pltpu.VMEM((s_pad, 1), jnp.float32),            # segment counts
            ],
        ),
        compiler_params=pltpu.CompilerParams(
            dimension_semantics=("parallel", "arbitrary"),
            vmem_limit_bytes=vmem_limit,
        ),
        interpret=interpret,
    )(x, ids_row, scale_row, shift_row)

    return out_padded[:num_seg, :]


def pooling_reference(x, ids, gamma, beta, running_mean, running_var, num_seg):
    inv_std = lax.rsqrt(running_var + BN_EPS)
    x_bn = (x - running_mean) * inv_std * gamma + beta
    x_act = jnp.where(x_bn > 0, x_bn, ELU_ALPHA * jnp.expm1(x_bn))
    sums = jnp.zeros((num_seg, x.shape[1]), jnp.float32).at[ids].add(x_act)
    counts = jnp.zeros((num_seg,), jnp.float32).at[ids].add(1.0)
    return sums / jnp.maximum(counts, 1.0)[:, None]


if __name__ == "__main__":
    key = jax.random.PRNGKey(0)
    k_x, k_ids, k_g, k_b, k_m, k_v = jax.random.split(key, 6)

    # 300 nodes, 200 features, 5 graphs.
    N, F, NUM_SEG = 300, 200, 5
    x = jax.random.normal(k_x, (N, F), dtype=jnp.float32)
    ids = jax.random.randint(k_ids, (N,), 0, NUM_SEG, dtype=jnp.int32)

    # Deterministic BatchNorm1d parameters / running stats (in_features = F).
    gamma = 1.0 + 0.1 * jax.random.normal(k_g, (F,), dtype=jnp.float32)
    beta = 0.1 * jax.random.normal(k_b, (F,), dtype=jnp.float32)
    running_mean = 0.05 * jax.random.normal(k_m, (F,), dtype=jnp.float32)
    running_var = 1.0 + 0.1 * jax.random.uniform(k_v, (F,), dtype=jnp.float32)

    ref = pooling_reference(x, ids, gamma, beta, running_mean, running_var, NUM_SEG)

    # Multi-tile path: 3 ragged N tiles of 128 over 300 rows (row mask + padded
    # ids) and 2 ragged F tiles of 128 over 200 features (masked writeback).
    out_tiled = pooling_forward(x, ids, gamma, beta, running_mean, running_var,
                                NUM_SEG, tile_n=128, tile_f=128)
    out_tiled = jax.block_until_ready(out_tiled)
    assert out_tiled.shape == (NUM_SEG, F)
    # f32 MXU matmul + exact division -> much tighter tolerance than before.
    assert jnp.allclose(out_tiled, ref, atol=2e-3, rtol=2e-3), "tiled mismatch"

    # Default (large-tile) path: single full-extent block, x passed untouched.
    out_default = pooling_forward(x, ids, gamma, beta, running_mean,
                                  running_var, NUM_SEG)
    out_default = jax.block_until_ready(out_default)
    assert out_default.shape == (NUM_SEG, F)
    assert jnp.allclose(out_default, ref, atol=2e-3, rtol=2e-3), "default mismatch"

    print("KERNEL_OK")
</pallas_src>

<mosaic_0001>
module attributes {stable_mosaic.version = 11 : i64} {
  func.func @_pooling_kernel(%arg0: i32, %arg1: i32, %arg2: memref<128x128xf32, #tpu.memory_space<vmem>>, %arg3: memref<1x128xi32, #tpu.memory_space<vmem>>, %arg4: memref<1x128xf32, #tpu.memory_space<vmem>>, %arg5: memref<1x128xf32, #tpu.memory_space<vmem>>, %arg6: memref<8x128xf32, #tpu.memory_space<vmem>>, %arg7: memref<8x1xf32, #tpu.memory_space<vmem>>) attributes {dimension_semantics = [#tpu.dimension_semantics<parallel>, #tpu.dimension_semantics<arbitrary>], iteration_bounds = array<i64: 2, 3>, scalar_prefetch = 0 : i64, scratch_operands = 1 : i64, tpu.core_type = #tpu.core_type<tc>, window_params = [{transform_indices = @transform_0, window_bounds = array<i64: 128, 128>}, {transform_indices = @transform_1, window_bounds = array<i64: 1, 128>}, {transform_indices = @transform_2, window_bounds = array<i64: 1, 128>}, {transform_indices = @transform_3, window_bounds = array<i64: 1, 128>}, {transform_indices = @transform_4, window_bounds = array<i64: 8, 128>}]} {
    %c0_i32 = arith.constant 0 : i32
    %0 = arith.cmpi eq, %arg1, %c0_i32 : i32
    %1 = arith.extui %0 : i1 to i32
    %c0_i32_0 = arith.constant 0 : i32
    %2 = arith.cmpi ne, %1, %c0_i32_0 : i32
    scf.if %2 {
      %cst_22 = arith.constant 0.000000e+00 : f32
      %46 = vector.broadcast %cst_22 : f32 to vector<8x128xf32>
      %c0_23 = arith.constant 0 : index
      %c0_24 = arith.constant 0 : index
      %47 = vector.load %arg6[%c0_23, %c0_24] : memref<8x128xf32, #tpu.memory_space<vmem>>, vector<8x128xf32>
      tpu.vector_store %arg6[%c0_23, %c0_24], %46 {strides = array<i32>} : memref<8x128xf32, #tpu.memory_space<vmem>>, vector<8x128xf32>,
      %cst_25 = arith.constant 0.000000e+00 : f32
      %48 = vector.broadcast %cst_25 : f32 to vector<8x1xf32>
      %c0_26 = arith.constant 0 : index
      %c0_27 = arith.constant 0 : index
      %49 = vector.load %arg7[%c0_26, %c0_27] : memref<8x1xf32, #tpu.memory_space<vmem>>, vector<8x1xf32>
      tpu.vector_store %arg7[%c0_26, %c0_27], %48 {strides = array<i32>} : memref<8x1xf32, #tpu.memory_space<vmem>>, vector<8x1xf32>,
    } else {
    }
    %c0 = arith.constant 0 : index
    %c0_1 = arith.constant 0 : index
    %3 = vector.load %arg2[%c0, %c0_1] : memref<128x128xf32, #tpu.memory_space<vmem>>, vector<128x128xf32>
    %c0_2 = arith.constant 0 : index
    %c0_3 = arith.constant 0 : index
    %4 = vector.load %arg4[%c0_2, %c0_3] : memref<1x128xf32, #tpu.memory_space<vmem>>, vector<1x128xf32>
    %5 = vector.broadcast %4 : vector<1x128xf32> to vector<128x128xf32>
    %6 = arith.mulf %3, %5 : vector<128x128xf32>
    %c0_4 = arith.constant 0 : index
    %c0_5 = arith.constant 0 : index
    %7 = vector.load %arg5[%c0_4, %c0_5] : memref<1x128xf32, #tpu.memory_space<vmem>>, vector<1x128xf32>
    %8 = vector.broadcast %7 : vector<1x128xf32> to vector<128x128xf32>
    %9 = arith.addf %6, %8 : vector<128x128xf32>
    %cst = arith.constant 0.000000e+00 : f32
    %10 = vector.broadcast %cst : f32 to vector<128x128xf32>
    %11 = arith.cmpf ogt, %9, %10 : vector<128x128xf32>
    %12 = math.exp %9 : vector<128x128xf32>
    %cst_6 = arith.constant 1.000000e+00 : f32
    %13 = vector.broadcast %cst_6 : f32 to vector<128x128xf32>
    %14 = arith.subf %12, %13 : vector<128x128xf32>
    %cst_7 = arith.constant 1.000000e+00 : f32
    %15 = vector.broadcast %cst_7 : f32 to vector<128x128xf32>
    %16 = arith.mulf %15, %14 : vector<128x128xf32>
    %17 = arith.select %11, %9, %16 : vector<128x128xi1>, vector<128x128xf32>
    %18 = tpu.iota {dimensions = array<i32: 0>} : vector<128x1xi32>
    %c128_i32 = arith.constant 128 : i32
    %19 = arith.muli %arg1, %c128_i32 : i32
    %20 = vector.broadcast %19 : i32 to vector<128x1xi32>
    %21 = arith.addi %18, %20 : vector<128x1xi32>
    %c300_i32 = arith.constant 300 : i32
    %22 = vector.broadcast %c300_i32 : i32 to vector<128x1xi32>
    %23 = arith.cmpi slt, %21, %22 : vector<128x1xi32>
    %cst_8 = arith.constant 0.000000e+00 : f32
    %24 = vector.shape_cast %23 : vector<128x1xi1> to vector<128x1xi1>
    %25 = vector.broadcast %24 : vector<128x1xi1> to vector<128x128xi1>
    %26 = vector.broadcast %cst_8 : f32 to vector<128x128xf32>
    %27 = arith.select %25, %17, %26 : vector<128x128xi1>, vector<128x128xf32>
    %c0_9 = arith.constant 0 : index
    %c0_10 = arith.constant 0 : index
    %28 = vector.load %arg3[%c0_9, %c0_10] : memref<1x128xi32, #tpu.memory_space<vmem>>, vector<1x128xi32>
    %29 = tpu.iota {dimensions = array<i32: 0>} : vector<8x128xi32>
    %30 = vector.broadcast %28 : vector<1x128xi32> to vector<8x128xi32>
    %31 = arith.cmpi eq, %29, %30 : vector<8x128xi32>
    %32 = arith.extui %31 : vector<8x128xi1> to vector<8x128xi32>
    %33 = arith.sitofp %32 : vector<8x128xi32> to vector<8x128xf32>
    %c0_11 = arith.constant 0 : index
    %c0_12 = arith.constant 0 : index
    %34 = vector.load %arg6[%c0_11, %c0_12] : memref<8x128xf32, #tpu.memory_space<vmem>>, vector<8x128xf32>
    %cst_13 = arith.constant dense<0.000000e+00> : vector<8x128xf32>
    %35 = tpu.matmul %33, %27, %cst_13 {dimension_numbers = #tpu.dot_dimension_numbers<[1], [0], [0], [1], [0, 0, 1, 1], [], []>} : vector<8x128xf32>, vector<128x128xf32>, vector<8x128xf32> -> vector<8x128xf32>
    %36 = arith.addf %34, %35 : vector<8x128xf32>
    %c0_14 = arith.constant 0 : index
    %c0_15 = arith.constant 0 : index
    %37 = vector.load %arg6[%c0_14, %c0_15] : memref<8x128xf32, #tpu.memory_space<vmem>>, vector<8x128xf32>
    tpu.vector_store %arg6[%c0_14, %c0_15], %36 {strides = array<i32>} : memref<8x128xf32, #tpu.memory_space<vmem>>, vector<8x128xf32>,
    %c0_16 = arith.constant 0 : index
    %c0_17 = arith.constant 0 : index
    %38 = vector.load %arg7[%c0_16, %c0_17] : memref<8x1xf32, #tpu.memory_space<vmem>>, vector<8x1xf32>
    %cst_18 = arith.constant dense<0.000000e+00> : vector<8xf32>
    %39 = vector.multi_reduction <add>, %33, %cst_18 [1] : vector<8x128xf32> to vector<8xf32>
    %40 = vector.shape_cast %39 : vector<8xf32> to vector<8x1xf32>
    %41 = arith.addf %38, %40 : vector<8x1xf32>
    %c0_19 = arith.constant 0 : index
    %c0_20 = arith.constant 0 : index
    %42 = vector.load %arg7[%c0_19, %c0_20] : memref<8x1xf32, #tpu.memory_space<vmem>>, vector<8x1xf32>
    tpu.vector_store %arg7[%c0_19, %c0_20], %41 {strides = array<i32>} : memref<8x1xf32, #tpu.memory_space<vmem>>, vector<8x1xf32>,
    %c2_i32 = arith.constant 2 : i32
    %43 = arith.cmpi eq, %arg1, %c2_i32 : i32
    %44 = arith.extui %43 : i1 to i32
    %c0_i32_21 = arith.constant 0 : i32
    %45 = arith.cmpi ne, %44, %c0_i32_21 : i32
    scf.if %45 {
      %c0_22 = arith.constant 0 : index
      %c0_23 = arith.constant 0 : index
      %46 = vector.load %arg6[%c0_22, %c0_23] : memref<8x128xf32, #tpu.memory_space<vmem>>, vector<8x128xf32>
      %c0_24 = arith.constant 0 : index
      %c0_25 = arith.constant 0 : index
      %47 = vector.load %arg7[%c0_24, %c0_25] : memref<8x1xf32, #tpu.memory_space<vmem>>, vector<8x1xf32>
      %cst_26 = arith.constant 1.000000e+00 : f32
      %48 = vector.broadcast %cst_26 : f32 to vector<8x1xf32>
      %49 = arith.maximumf %47, %48 : vector<8x1xf32>
      %50 = vector.broadcast %49 : vector<8x1xf32> to vector<8x128xf32>
      %51 = arith.divf %46, %50 : vector<8x128xf32>
      %c0_27 = arith.constant 0 : index
      %c0_28 = arith.constant 0 : index
      %52 = vector.load %arg6[%c0_27, %c0_28] : memref<8x128xf32, #tpu.memory_space<vmem>>, vector<8x128xf32>
      tpu.vector_store %arg6[%c0_27, %c0_28], %51 {strides = array<i32>} : memref<8x128xf32, #tpu.memory_space<vmem>>, vector<8x128xf32>,
    } else {
    }
    return
  }
  func.func @transform_0(%arg0: i32, %arg1: i32) -> (i32, i32) {
    %c0_i32 = arith.constant 0 : i32
    return %arg1, %arg0 : i32, i32
  }
  func.func @transform_1(%arg0: i32, %arg1: i32) -> (i32, i32) {
    %c0_i32 = arith.constant 0 : i32
    %c0_i32_0 = arith.constant 0 : i32
    return %c0_i32, %arg1 : i32, i32
  }
  func.func @transform_2(%arg0: i32, %arg1: i32) -> (i32, i32) {
    %c0_i32 = arith.constant 0 : i32
    %c0_i32_0 = arith.constant 0 : i32
    return %c0_i32, %arg0 : i32, i32
  }
  func.func @transform_3(%arg0: i32, %arg1: i32) -> (i32, i32) {
    %c0_i32 = arith.constant 0 : i32
    %c0_i32_0 = arith.constant 0 : i32
    return %c0_i32, %arg0 : i32, i32
  }
  func.func @transform_4(%arg0: i32, %arg1: i32) -> (i32, i32) {
    %c0_i32 = arith.constant 0 : i32
    %c0_i32_0 = arith.constant 0 : i32
    return %c0_i32, %arg0 : i32, i32
  }
}

</mosaic_0001>

<bundles_post_ra>
// kernel: tpu_custom_call.1
= control target key start
LH: loop header
LB: loop body
LE: loop exit
PB: predicated region body
PF: predicated region fallthrough
CT: control target
= control target key end

     0   :  { %s2019_s0 = inlined_call_operand.vmem [shape: f32[300,200], index: 0, kind: input, shape index: {}]   ;;  %s2020_s1 = inlined_call_operand.vmem [shape: s32[1,384], index: 1, kind: input, shape index: {}]   ;;  %s2021_s2 = inlined_call_operand.vmem [shape: f32[1,200], index: 2, kind: input, shape index: {}]   ;;  %s2022_s3 = inlined_call_operand.vmem [shape: f32[1,200], index: 3, kind: input, shape index: {}]   ;;  %s2023_s4 = inlined_call_operand.hbm [shape: f32[8,200], index: 4, kind: output, shape index: {}]  }
   0x1   :  { %2028 = sst [smem:[#allocation11_spill]] %s2019_s0 }
   0x2   :  { %9 = vsyncpa [#allocation5], 0 }
   0x3   :  { %11 = vsyncpa [#allocation5 + $0x1], 0  ;;  %s1499_s15 = smov 0   ;;  %s1501_s16 = smov 0  }
   0x4   :  { %s1503_s17 = smov 0   ;;  %s1505_s18 = smov 0  }
   0x5   :  { %s1507_s19 = smov 0   ;;  %s1509_s20 = smov 0  }
   0x6   :  { %s1511_s21 = smov 0   ;;  %s1513_s22 = smov 0  }
   0x7   :  { %s1515_s23 = smov 0   ;;  %s1517_s24 = smov 0  }
   0x8 LB: > { %2029 = sst [smem:[#allocation7_spill]] %s1425_s22  ;;  %s945_s25 = sadd.s32 4294967295, %s1433_s24   ;;  %s1433_s24 = sphi %s1517_s24, %s17_s24   ;;  %s1429_s23 = sphi %s1515_s23, %s2047_s23   ;;  %s1425_s22 = sphi %s1513_s22, %s2046_s22   ;;  %s1421_s21 = sphi %s1511_s21, %s2045_s21   ;;  %s1417_s20 = sphi %s1509_s20, %s2044_s20   ;;  %s1413_s19 = sphi %s1507_s19, %s2052_s19   ;;  %s1409_s18 = sphi %s1505_s18, %s2051_s18   ;;  %s1405_s17 = sphi %s1503_s17, %s2050_s17   ;;  %s1401_s16 = sphi %s1501_s16, %s2049_s16   ;;  %s1397_s15 = sphi %s1499_s15, %s2048_s15  }
   0x9   : > { %2030 = sst [smem:[#allocation8_spill]] %s1429_s23  ;;  %s946_s26 = sadd.s32 4294967294, %s1433_s24  }
   0xa   : > { %s26_s27 = sadd.s32 1, %s1425_s22  ;;  %s29_s28 = sadd.s32 1, %s1429_s23 }
   0xb   : > { %p27_p0 = scmp.ge.s32.totalorder %s26_s27, 3  ;;  %s38_s29 = sadd.s32 1, %s1413_s19 }
   0xc   : > { %p45_p1 = scmp.ne.s32.totalorder %s1413_s19, %s1409_s18  ;;  %p46_p2 = scmp.eq.s32.totalorder %s1433_s24, 0 }
   0xd   : > { %s2054_s27 = smov (%p27_p0, %s26_s27), 0  ;;  %s2056_s28 = smov (!%p27_p0, %s29_s28), %s1429_s23 }
   0xe   : > { %2031 = sst [smem:[#allocation9_spill]] %s2054_s27  ;;  %s33_s30 = ssub.s32 %s1425_s22, %s2054_s27 }
   0xf   : > { %p1562_p3 = por %p46_p2, %p45_p1  ;;  %p31_p4 = scmp.ge.s32.totalorder %s2056_s28, 2 }
  0x10   : > { %s142_s6 = sadd.s32 1, %s1405_s17  ;;  %p152_p5 = scmp.ne.s32.totalorder %s1405_s17, %s1401_s16 }
  0x11   : > { %p153_p6 = scmp.eq.s32.totalorder %s945_s25, 5  ;;  %s2058_s28 = smov (%p31_p4, %s2056_s28), 0 }
  0x12   : > { %2033 = sst [smem:[#allocation10_spill]] %s2058_s28  ;;  %p158_p8 = scmp.ne.s32.totalorder %s1401_s16, %s1397_s15 }
  0x13   : > { %p1571_p7 = por %p153_p6, %p152_p5  ;;  %s34_s8 = ssub.s32 %s1429_s23, %s2058_s28 }
  0x14   : > { %p159_p9 = scmp.eq.s32.totalorder %s946_s26, 5  ;;  %s35_s9 = sor.u32 %s34_s8, %s33_s30 }
  0x15   : > { %p140_p10 = scmp.eq.s32.totalorder %s34_s8, 0  ;;  %p36_p11 = scmp.eq.s32.totalorder %s35_s9, 0 }
  0x16   : > { %p1579_p12 = por %p159_p9, %p158_p8  ;;  %p948_p13 = scmp.ge.s32.totalorder %s1433_s24, 6 }
  0x17   : > { %s1584_s11 = scalar_select %p140_p10, %s1405_s17, %s142_s6  }
  0x18   : > { %s1587_s12 = scalar_select %p36_p11, %s1413_s19, %s38_s29  }
  0x19   : > { %175 = sbr.rel (%p948_p13) target bundleno = 88 (0x58), region = 16 }
  0x20   : > { %178 = sbr.rel (!%p1562_p3) target bundleno = 88 (0x58), region = 20  ;;  %s180_s13 = sand.u32 (%p1562_p3), 1, %s1413_s19  }
  0x21   : > { %s950_s14 = sshll.u32 (%p1562_p3), %s1425_s22, 4  ;;  %s949_s25 = sshll.u32 (%p1562_p3), %s180_s13, 7 }
  0x22   : > { %s184_s26 = ssub.s32 (%p1562_p3), 38, %s950_s14  ;;  %s1012_s30 = sshll.u32 (%p1562_p3), %s1425_s22, 5 }
  0x23   : > { %p185_p0 = scmp.lt.s32.totalorder (%p1562_p3), %s184_s26, 16  ;;  %s190_s29 = sadd.s32 (%p1562_p3), %s1429_s23, %s1012_s30 }
  0x24   : > { %s954_s8 = sshll.u32 (%p1562_p3), %s190_s29, 3  ;;  %s2036_s0 = sld [smem:[#allocation11_spill]] (%p1562_p3) }
  0x25   : > { %s1604_s27 = scalar_lea.vmem (%p1562_p3), [#allocation3], %s949_s25  }
  0x27   : > { %s2060_s26 = smov (!%p185_p0, %s184_s26), 16 }
  0x28   : > { %s951_s6 = sshll.u32 %s2060_s26, 7 }
  0x29   : > { %p955_p1 = scmp.eq.s32.totalorder %s951_s6, 0 }
  0x2a   : > { %s1602_s5 = scalar_lea.vmem %s2036_s0, %s954_s8   ;;  %s1607_s13 = sshrl.u32 (!%p955_p1), %s2060_s26, 4 }
  0x2b   : > { %195 = sbr.rel (%p955_p1) target bundleno = 88 (0x58), region = 24  ;;  %p956_p2 = scmp.le.s32.totalorder (!%p955_p1), %s1607_s13, 0 }
  0x32   : > { %872 = sbr.rel (%p956_p2) target bundleno = 67 (0x43), region = 147  ;;  %s2037_s14 = smov (!%p956_p2), %s1604_s27 }
  0x33   : > { %s2038_s30 = smov (!%p956_p2), %s1602_s5  ;;  %s1616_s29 = smov (!%p956_p2), 0  }
  0x34   : > { %s1618_s28 = smov (!%p956_p2), 0  }
  0x39 LB: >> { %v287_v0 = vld [vmem:[%s1441_s30] sm:$0xff]  ;;  %v289_v1 = vld [vmem:[%s1441_s30 + $0x10] sm:$0xff]  ;;  %s319_s25 = sadd.s32 1, %s1445_s29  ;;  %s281_s28 = sadd.s32 1, %s1449_s28   ;;  %s1449_s28 = sphi %s1618_s28, %s281_s28   ;;  %s1445_s29 = sphi %s1616_s29, %s2039_s29   ;;  %s1441_s30 = sphi %s2038_s30, %s324_s30   ;;  %s1437_s14 = sphi %s2037_s14, %s325_s14  }
  0x3a   : >> { %v291_v2 = vld [vmem:[%s1441_s30 + $0x20] sm:$0xff]  ;;  %288 = vst [vmem:[%s1437_s14] sm:$0xff] %v287_v0  ;;  %290 = vst [vmem:[%s1437_s14 + $0x8] sm:$0xff] %v289_v1  ;;  %v293_v3 = vld [vmem:[%s1441_s30 + $0x30] sm:$0xff]  ;;  %p320_p3 = scmp.ge.s32.totalorder %s319_s25, %s1607_s13  ;;  %p280_p4 = scmp.ge.s32.totalorder %s281_s28, %s1607_s13 }
  0x3b   : >> { %292 = vst [vmem:[%s1437_s14 + $0x10] sm:$0xff] %v291_v2  ;;  %v295_v4 = vld [vmem:[%s1441_s30 + $0x40] sm:$0xff]  ;;  %v297_v5 = vld [vmem:[%s1441_s30 + $0x50] sm:$0xff]  ;;  %294 = vst [vmem:[%s1437_s14 + $0x18] sm:$0xff] %v293_v3 }
  0x3c   : >> { %296 = vst [vmem:[%s1437_s14 + $0x20] sm:$0xff] %v295_v4  ;;  %298 = vst [vmem:[%s1437_s14 + $0x28] sm:$0xff] %v297_v5  ;;  %v299_v6 = vld [vmem:[%s1441_s30 + $0x60] sm:$0xff]  ;;  %v301_v7 = vld [vmem:[%s1441_s30 + $0x70] sm:$0xff]  ;;  %s2062_s25 = smov (%p320_p3, %s319_s25), 0  ;;  %283 = sbr.rel (!%p280_p4) target bundleno = 57 (0x39), region = 153 }
  0x3d   : >> { %v303_v8 = vld [vmem:[%s1441_s30 + $0x80] sm:$0xff]  ;;  %300 = vst [vmem:[%s1437_s14 + $0x30] sm:$0xff] %v299_v6  ;;  %302 = vst [vmem:[%s1437_s14 + $0x38] sm:$0xff] %v301_v7  ;;  %v305_v9 = vld [vmem:[%s1441_s30 + $0x90] sm:$0xff]  ;;  %s957_s6 = sshll.u32 %s2062_s25, 8  ;;  %s958_s8 = sshll.u32 %s2062_s25, 7 }
  0x3e   : >> { %304 = vst [vmem:[%s1437_s14 + $0x40] sm:$0xff] %v303_v8  ;;  %v307_v10 = vld [vmem:[%s1441_s30 + $0xa0] sm:$0xff]  ;;  %v309_v11 = vld [vmem:[%s1441_s30 + $0xb0] sm:$0xff]  ;;  %306 = vst [vmem:[%s1437_s14 + $0x48] sm:$0xff] %v305_v9  ;;  %s2039_s29 = smov %s2062_s25 }
  0x3f   : >> { %308 = vst [vmem:[%s1437_s14 + $0x50] sm:$0xff] %v307_v10  ;;  %310 = vst [vmem:[%s1437_s14 + $0x58] sm:$0xff] %v309_v11  ;;  %v311_v12 = vld [vmem:[%s1441_s30 + $0xc0] sm:$0xff]  ;;  %v313_v13 = vld [vmem:[%s1441_s30 + $0xd0] sm:$0xff] }
  0x40   : >> { %v315_v14 = vld [vmem:[%s1441_s30 + $0xe0] sm:$0xff]  ;;  %312 = vst [vmem:[%s1437_s14 + $0x60] sm:$0xff] %v311_v12  ;;  %314 = vst [vmem:[%s1437_s14 + $0x68] sm:$0xff] %v313_v13  ;;  %v317_v15 = vld [vmem:[%s1441_s30 + $0xf0] sm:$0xff]  ;;  %s324_s30 = scalar_lea.vmem %s1602_s5, %s957_s6  }
  0x41   : >> { %316 = vst [vmem:[%s1437_s14 + $0x70] sm:$0xff] %v315_v14  ;;  %318 = vst [vmem:[%s1437_s14 + $0x78] sm:$0xff] %v317_v15  ;;  %s325_s14 = scalar_lea.vmem %s1604_s27, %s958_s8 [#allocation3]  }
  0x43 PF: > { %s1676_s9 = sand.u32 15, %s2060_s26   ;;  %s1013_s6 = sshll.u32 %s1607_s13, 8 }
  0x44   : > { %s1680_s8 = scalar_lea.vmem %s1602_s5, %s1013_s6   ;;  %s1014_s0 = sshll.u32 %s1607_s13, 7 }
  0x45   : > { %s332_s23 = scalar_lea.vmem %s1604_s27, %s1014_s0 [#allocation3]   ;;  %p962_p5 = scmp.le.s32.totalorder %s1676_s9, 0 }
  0x46   : > { %s1451_s25 = smov (!%p962_p5), %s332_s23   ;;  %s1455_s28 = smov (!%p962_p5), %s1680_s8  }
  0x47   : > { %886 = sbr.rel (%p962_p5) target bundleno = 88 (0x58), region = 158  ;;  %s1459_s22 = smov (!%p962_p5), 0  }
  0x48   : > { %s1463_s14 = smov (!%p962_p5), 0  }
  0x4e LB: >> { %v342_v16 = vld [vmem:[%s1457_s28] sm:$0xff]  ;;  %s344_s26 = sadd.s32 1, %s1461_s22  ;;  %s336_s14 = sadd.s32 1, %s1465_s14   ;;  %s1465_s14 = sphi %s1463_s14, %s336_s14   ;;  %s1461_s22 = sphi %s1459_s22, %s1460_s22   ;;  %s1457_s28 = sphi %s1455_s28, %s349_s28   ;;  %s1453_s25 = sphi %s1451_s25, %s350_s25  }
  0x4f   : >> { %343 = vst [vmem:[%s1453_s25] sm:$0xff] %v342_v16  ;;  %p345_p6 = scmp.ge.s32.totalorder %s344_s26, %s1676_s9  ;;  %p335_p8 = scmp.ge.s32.totalorder %s336_s14, %s1676_s9 }
  0x51   : >> { %s2064_s26 = smov (%p345_p6, %s344_s26), 0  ;;  %338 = sbr.rel (!%p335_p8) target bundleno = 78 (0x4e), region = 164 }
  0x52   : >> { %s963_s0 = sshll.u32 %s2064_s26, 4  ;;  %s964_s27 = sshll.u32 %s2064_s26, 3 }
  0x53   : >> { %s349_s28 = scalar_lea.vmem %s1680_s8, %s963_s0   ;;  %s350_s25 = scalar_lea.vmem %s332_s23, %s964_s27 [#allocation3]  }
  0x54   : >> { %s1460_s22 = smov %s2064_s26  }
  0x58 PF: > { %p965_p9 = scmp.ge.s32.totalorder %s1433_s24, 1  ;;  %p373_p10 = scmp.lt.s32.totalorder %s1433_s24, 7 }
  0x5a   : > { %p374_p11 = pnand %p965_p9, %p373_p10 }
  0x5b   : > { %s380_s22 = sand.u32 (!%p374_p11), 1, %s1409_s18   ;;  %s411_s5 = sand.u32 (!%p374_p11), 1, %s1401_s16  }
  0x5c   : > { %377 = sbr.rel (%p374_p11) target bundleno = 464 (0x1d0), region = 84  ;;  %s966_s13 = sshll.u32 (!%p374_p11), %s380_s22, 7 }
  0x5d   : > { %s967_s23 = sshll.u32 (!%p374_p11), %s411_s5, 3  ;;  %p419_p13 = scmp.lt.s32.totalorder (!%p374_p11), %s1417_s20, 2 }
  0x5e   : > { %p422_p0 = scmp.lt.s32.totalorder (!%p374_p11), %s1421_s21, 1  ;;  %s1711_s27 = scalar_lea.vmem (!%p374_p11), [#allocation3], %s966_s13 }
  0x5f   : > { %s1713_s22 = scalar_lea.vmem (!%p374_p11), [#allocation4], %s967_s23  ;;  %p968_p1 = scmp.ne.s32.totalorder (!%p374_p11), %s1417_s20, 0 }
  0x63   : > { %s1698_s30 = scalar_select %p419_p13, %s1417_s20, 2 }
  0x64   : > { %s423_s29 = scalar_select %p422_p0, %s1421_s21, 1 }
  0x65   : > { %s421_s8 = scalar_lea.vmem %s2020_s1, %s1698_s30  ;;  %431 = sbr.rel (%p968_p1) target bundleno = 108 (0x6c), region = 92  ;;  %vm433_vm0 = vcmask (!%p968_p1), 7168   ;;  %v1467_v17 = vmov (!%p968_p1), 0.0  }
  0x66   : > { %s424_s14 = scalar_lea.vmem %s2021_s2, %s423_s29  ;;  %s427_s0 = scalar_lea.vmem %s2022_s3, %s423_s29  ;;  %432 = vst [vmem:[%s1713_s22] sm:$0xff] (!%p968_p1), %v1467_v17  ;;  %434 = vst.msk [vmem:[#allocation2] sm:$0xff] (!%p968_p1), %vm433_vm0, %v1467_v17 }
  0x6c PF: > { %v435_v18 = vld [vmem:[%s1711_s27] sm:$0xff]  ;;  %v436_v19 = vld [vmem:[%s1711_s27 + $0x8] sm:$0xff]  ;;  %v1719_v20 = vld [vmem:[%s424_s14] ss:$0 sm:$0xff]  ;;  %v577_v21 = vlaneseq  ;;  %v1468_v22 = vmov 0.0|0.0   ;;  %s987_s13 = sshll.u32 %s1417_s20, 7 }
  0x6d   : > { %1067 = vmatprep.subr.bf16.mxu0 %v1468_v22  ;;  %v458_v23 = vmul.f32 %v1719_v20, %v435_v18  ;;  %v459_v24 = vmul.f32 %v1719_v20, %v436_v19  ;;  %v1724_v25 = vld [vmem:[%s427_s0] ss:$0 sm:$0xff]  ;;  %v437_v26 = vld [vmem:[%s1711_s27 + $0x10] sm:$0xff]  ;;  %v439_v30 = vld [vmem:[%s1711_s27 + $0x20] sm:$0xff]  ;;  %vm1469_vm1 = vmmov 0   ;;  %v1470_v35 = vmov 0.0  }
  0x6e   : > { %v438_v27 = vld [vmem:[%s1711_s27 + $0x18] sm:$0xff]  ;;  %v460_v28 = vmul.f32 %v1719_v20, %v437_v26  ;;  %v440_v31 = vld [vmem:[%s1711_s27 + $0x28] sm:$0xff]  ;;  %v1739_v34 = vshrl.u32 %v577_v21, 7  ;;  %1064 = vmatprep.mubr.msk.f32.mxu0 %vm1469_vm1, %v1470_v35  ;;  %v462_v38 = vmul.f32 %v1719_v20, %v439_v30  ;;  %v1751_v41 = vstv %s987_s13  ;;  %v441_v50 = vld [vmem:[%s1711_s27 + $0x30] sm:$0xff]  ;;  %p1007_p2 = scmp.ne.s32.totalorder %s1417_s20, 2 }
  0x6f   : > { %v461_v29 = vmul.f32 %v1719_v20, %v438_v27  ;;  %v1734_v32 = vadd.f32 %v1724_v25, %v458_v23  ;;  %v1737_v33 = vadd.f32 %v1724_v25, %v459_v24  ;;  %v463_v42 = vmul.f32 %v1719_v20, %v440_v31  ;;  %v442_v53 = vld [vmem:[%s1711_s27 + $0x38] sm:$0xff]  ;;  %v443_v56 = vld [vmem:[%s1711_s27 + $0x40] sm:$0xff]  ;;  %v444_v59 = vld [vmem:[%s1711_s27 + $0x48] sm:$0xff] }
  0x70   : > { %v1743_v36 = vadd.f32 %v1724_v25, %v460_v28  ;;  %v579_v43 = vadd.s32 8, %v1739_v34  ;;  %v596_v46 = vadd.s32 %v1751_v41, %v1739_v34  ;;  %v580_v47 = vadd.s32 16, %v1739_v34  ;;  %v445_v24 = vld [vmem:[%s1711_s27 + $0x50] sm:$0xff]  ;;  %v1914_v27 = vld [vmem:[%s421_s8] ss:$0 sm:$0xff] }
  0x71   : > { %v1746_v37 = vadd.f32 %v1724_v25, %v461_v29  ;;  %v513_v39 = vmul.f32 1.442695, %v1734_v32  ;;  %v515_v40 = vmul.f32 1.442695, %v1737_v33  ;;  %v1761_v48 = vadd.f32 %v1724_v25, %v462_v38  ;;  %v446_v29 = vld [vmem:[%s1711_s27 + $0x58] sm:$0xff] }
  0x72   : > { %v517_v44 = vmul.f32 1.442695, %v1743_v36  ;;  %v1764_v49 = vadd.f32 %v1724_v25, %v463_v42  ;;  %v581_v51 = vadd.s32 24, %v1739_v34  ;;  %vm497_vm2 = vcmp.gt.f32.partialorder %v1734_v32, 0.0 }
  0x73   : > { %1256 = vpow2.f32 %v513_v39  ;;  %v519_v45 = vmul.f32 1.442695, %v1746_v37  ;;  %v521_v52 = vmul.f32 1.442695, %v1761_v48  ;;  %vm498_vm3 = vcmp.gt.f32.partialorder %v1737_v33, 0.0 }
  0x74   : > { %1258 = vpow2.f32 %v515_v40  ;;  %v597_v54 = vadd.s32 %v1751_v41, %v579_v43  ;;  %v523_v55 = vmul.f32 1.442695, %v1764_v49  ;;  %vm612_vm4 = vcmp.lt.s32.totalorder %v596_v46, 300 }
  0x75   : > { %1260 = vpow2.f32 %v517_v44  ;;  %v1776_v57 = vadd.s32 %v1751_v41, %v580_v47  ;;  %v464_v58 = vmul.f32 %v1719_v20, %v441_v50  ;;  %vm499_vm5 = vcmp.gt.f32.partialorder %v1743_v36, 0.0  ;;  %v447_v44 = vld [vmem:[%s1711_s27 + $0x60] sm:$0xff] }
  0x76   : > { %1262 = vpow2.f32 %v519_v45  ;;  %v582_v60 = vadd.s32 32, %v1739_v34  ;;  %v465_v61 = vmul.f32 %v1719_v20, %v442_v53  ;;  %vm500_vm6 = vcmp.gt.f32.partialorder %v1746_v37, 0.0 }
  0x77   : > { %1264 = vpow2.f32 %v521_v52  ;;  %v599_v62 = vadd.s32 %v1751_v41, %v581_v51  ;;  %v1786_v63 = vadd.f32 %v1724_v25, %v464_v58  ;;  %v466_v0 = vmul.f32 %v1719_v20, %v443_v56  ;;  %v448_v51 = vld [vmem:[%s1711_s27 + $0x68] sm:$0xff] }
  0x78   : > { %1266 = vpow2.f32 %v523_v55  ;;  %vm613_vm7 = vcmp.lt.s32.totalorder %v597_v54, 300  ;;  %vm501_vm8 = vcmp.gt.f32.partialorder %v1761_v48, 0.0  ;;  %v1791_v1 = vadd.f32 %v1724_v25, %v465_v61 }
  0x79   : > { %v467_v2 = vmul.f32 %v1719_v20, %v444_v59  ;;  %vm614_vm9 = vcmp.lt.s32.totalorder %v1776_v57, 300  ;;  %v583_v3 = vadd.s32 40, %v1739_v34  ;;  %v525_v4 = vmul.f32 1.442695, %v1786_v63  ;;  %vm1822_vm12 = vmpackc.low %vm613_vm7, %vm612_vm4 }
  0x7a   : > { %v1798_v5 = vadd.f32 %v1724_v25, %v466_v0  ;;  %vm502_vm10 = vcmp.gt.f32.partialorder %v1764_v49, 0.0  ;;  %v1802_v7 = vadd.s32 %v1751_v41, %v582_v60  ;;  %v527_v8 = vmul.f32 1.442695, %v1791_v1 }
  0x7b   : > { %v1806_v9 = vadd.f32 %v1724_v25, %v467_v2  ;;  %vm615_vm11 = vcmp.lt.s32.totalorder %v599_v62, 300  ;;  %1268 = vpow2.f32 %v525_v4  ;;  %v584_v12 = vadd.s32 48, %v1739_v34 }
  0x7c   : > { %1270 = vpow2.f32 %v527_v8  ;;  %v585_v15 = vadd.s32 56, %v1739_v34  ;;  %v529_v16 = vmul.f32 1.442695, %v1798_v5  ;;  %v601_v21 = vadd.s32 %v1751_v41, %v583_v3  ;;  %vm1073_vm15 = vmpackc.low %vm615_vm11, %vm614_vm9 }
  0x7d   : > { %v1257_v6 = vpop.eup %1256  ;;  %v531_v23 = vmul.f32 1.442695, %v1806_v9  ;;  %vm616_vm13 = vcmp.lt.s32.totalorder %v1802_v7, 300  ;;  %v468_v43 = vmul.f32 %v1719_v20, %v445_v24  ;;  %v469_v46 = vmul.f32 %v1719_v20, %v446_v29 }
  0x7e   : > { %v1259_v10 = vpop.eup %1258  ;;  %v971_v11 = vadd.f32 -1.0, %v1257_v6  ;;  %1272 = vpow2.f32 %v529_v16  ;;  %v603_v42 = vadd.s32 %v1751_v41, %v585_v15  ;;  %vm617_vm14 = vcmp.lt.s32.totalorder %v601_v21, 300  ;;  %v450_v16 = vld [vmem:[%s1711_s27 + $0x78] sm:$0xff] }
  0x7f   : > { %v1261_v13 = vpop.eup %1260  ;;  %v972_v14 = vadd.f32 -1.0, %v1259_v10  ;;  %1274 = vpow2.f32 %v531_v23  ;;  %vm503_vm0 = vcmp.gt.f32.partialorder %v1786_v63, 0.0  ;;  %v586_v47 = vadd.s32 64, %v1739_v34 }
  0x80   : > { %v1263_v17 = vpop.eup %1262  ;;  %v561_v18 = vsel %vm497_vm2, %v1734_v32, %v971_v11  ;;  %v973_v19 = vadd.f32 -1.0, %v1261_v13  ;;  %v1851_v50 = vadd.f32 %v1724_v25, %v468_v43  ;;  %v587_v53 = vadd.s32 72, %v1739_v34 }
  0x81   : > { %v562_v26 = vsel %vm498_vm3, %v1737_v33, %v972_v14  ;;  %v974_v28 = vadd.f32 -1.0, %v1263_v17  ;;  %v1265_v30 = vpop.eup %1264  ;;  %v602_v33 = vadd.s32 %v1751_v41, %v584_v12  ;;  %v1859_v54 = vadd.f32 %v1724_v25, %v469_v46  ;;  %v449_v12 = vld [vmem:[%s1711_s27 + $0x70] sm:$0xff] }
  0x82   : > { %v1068_v31 = vpack.c.bf16 %v562_v26, %v561_v18  ;;  %v563_v32 = vsel %vm499_vm5, %v1743_v36, %v973_v19  ;;  %v1267_v38 = vpop.eup %1266  ;;  %v975_v40 = vadd.f32 -1.0, %v1265_v30  ;;  %v470_v55 = vmul.f32 %v1719_v20, %v447_v44  ;;  %vm1871_vm5 = vmpackc.low %vm617_vm14, %vm616_vm13 }
  0x83   : > { %v564_v39 = vsel %vm500_vm6, %v1746_v37, %v974_v28  ;;  %v976_v36 = vadd.f32 -1.0, %v1267_v38  ;;  %vm504_vm1 = vcmp.gt.f32.partialorder %v1791_v1, 0.0  ;;  %vm618_vm2 = vcmp.lt.s32.totalorder %v602_v33, 300 }
  0x84   : > { %1070 = vmatpush3.bf16.msk.msra.mxu0 %vm1822_vm12, %v1068_v31  ;;  %v1072_v45 = vpack.c.bf16 %v564_v39, %v563_v32  ;;  %v565_v37 = vsel %vm501_vm8, %v1761_v48, %v975_v40  ;;  %vm619_vm3 = vcmp.lt.s32.totalorder %v603_v42, 300  ;;  %v533_v48 = vmul.f32 1.442695, %v1851_v50 }
  0x85   : > { %1071 = vmatprep.subr.bf16.mxu0 %v1468_v22  ;;  %v566_v52 = vsel %vm502_vm10, %v1764_v49, %v976_v36  ;;  %v1269_v56 = vpop.eup %1268  ;;  %vm505_vm4 = vcmp.gt.f32.partialorder %v1798_v5, 0.0  ;;  %v535_v49 = vmul.f32 1.442695, %v1859_v54  ;;  %v471_v58 = vmul.f32 %v1719_v20, %v448_v51  ;;  %vm1081_vm7 = vmpackc.low %vm619_vm3, %vm618_vm2 }
  0x86   : > { %v1076_v57 = vpack.c.bf16 %v566_v52, %v565_v37  ;;  %v1271_v59 = vpop.eup %1270  ;;  %v977_v61 = vadd.f32 -1.0, %v1269_v56  ;;  %v604_v62 = vadd.s32 %v1751_v41, %v586_v47  ;;  %1276 = vpow2.f32 %v533_v48 }
  0x87   : > { %v1877_v0 = vadd.f32 %v1724_v25, %v470_v55  ;;  %v978_v2 = vadd.f32 -1.0, %v1271_v59  ;;  %v605_v3 = vadd.s32 %v1751_v41, %v587_v53  ;;  %1278 = vpow2.f32 %v535_v49 }
  0x88   : > { %1074 = vmatpush3.bf16.msk.msra.mxu0 %vm1073_vm15, %v1072_v45  ;;  %v1881_v4 = vadd.f32 %v1724_v25, %v471_v58  ;;  %v1273_v6 = vpop.eup %1272  ;;  %v567_v7 = vsel %vm503_vm0, %v1786_v63, %v977_v61  ;;  %v588_v8 = vadd.s32 80, %v1739_v34  ;;  %v589_v10 = vadd.s32 88, %v1739_v34  ;;  %v757_v61 = vld [vmem:[#allocation2] sm:$0xff] }
  0x89   : > { %1075 = vmatprep.subr.bf16.mxu0 %v1468_v22  ;;  %v537_v11 = vmul.f32 1.442695, %v1877_v0  ;;  %v1275_v13 = vpop.eup %1274  ;;  %v568_v14 = vsel %vm504_vm1, %v1791_v1, %v978_v2  ;;  %vm506_vm6 = vcmp.gt.f32.partialorder %v1806_v9, 0.0  ;;  %v979_v15 = vadd.f32 -1.0, %v1273_v6 }
  0x8a   : > { %v539_v63 = vmul.f32 1.442695, %v1881_v4  ;;  %v1080_v17 = vpack.c.bf16 %v568_v14, %v567_v7  ;;  %v980_v18 = vadd.f32 -1.0, %v1275_v13  ;;  %vm620_vm8 = vcmp.lt.s32.totalorder %v604_v62, 300 }
  0x8b   : > { %1280 = vpow2.f32 %v537_v11  ;;  %v569_v1 = vsel %vm505_vm4, %v1798_v5, %v979_v15  ;;  %vm621_vm9 = vcmp.lt.s32.totalorder %v605_v3, 300  ;;  %v472_v19 = vmul.f32 %v1719_v20, %v449_v12 }
  0x8c   : > { %1078 = vmatpush3.bf16.msk.msra.mxu0 %vm1871_vm5, %v1076_v57  ;;  %1282 = vpow2.f32 %v539_v63  ;;  %v570_v21 = vsel %vm506_vm6, %v1806_v9, %v980_v18  ;;  %v606_v23 = vadd.s32 %v1751_v41, %v588_v8  ;;  %v607_v24 = vadd.s32 %v1751_v41, %v589_v10  ;;  %vm1085_vm10 = vmpackc.low %vm621_vm9, %vm620_vm8 }
  0x8d   : > { %1079 = vmatprep.subr.bf16.mxu0 %v1468_v22  ;;  %v473_v26 = vmul.f32 %v1719_v20, %v450_v16  ;;  %v1084_v5 = vpack.c.bf16 %v570_v21, %v569_v1  ;;  %v590_v28 = vadd.s32 96, %v1739_v34  ;;  %v591_v29 = vadd.s32 104, %v1739_v34 }
  0x8e   : > { %v495_v9 = vadd.f32 %v1724_v25, %v472_v19  ;;  %vm507_vm11 = vcmp.gt.f32.partialorder %v1851_v50, 0.0  ;;  %vm508_vm12 = vcmp.gt.f32.partialorder %v1859_v54, 0.0  ;;  %vm681_vm13 = vcmp.eq.s32.totalorder %v1739_v34, %v1914_v27 }
  0x8f   : > { %v496_v20 = vadd.f32 %v1724_v25, %v473_v26  ;;  %vm622_vm14 = vcmp.lt.s32.totalorder %v606_v23, 300  ;;  %vm623_vm15 = vcmp.lt.s32.totalorder %v607_v24, 300  ;;  %v989_v33 = vsel %vm681_vm13, 1.0, %v1470_v35 }
  0x90   : > { %1082 = vmatpush3.bf16.msk.msra.mxu0 %vm1081_vm7, %v1080_v17  ;;  %v541_v30 = vmul.f32 1.442695, %v495_v9  ;;  %v1277_v31 = vpop.eup %1276  ;;  %v608_v39 = vadd.s32 %v1751_v41, %v590_v28  ;;  %v609_v40 = vadd.s32 %v1751_v41, %v591_v29  ;;  %758 = vadd.xlane.f32.xlu0 %v989_v33  ;;  %vm509_vm0 = vcmp.gt.f32.partialorder %v1877_v0, 0.0  ;;  %vm1089_vm1 = vmpackc.low %vm623_vm15, %vm622_vm14 }
  0x91   : > { %1083 = vmatprep.subr.bf16.mxu0 %v1468_v22  ;;  %v543_v32 = vmul.f32 1.442695, %v496_v20  ;;  %v1279_v38 = vpop.eup %1278  ;;  %v981_v25 = vadd.f32 -1.0, %v1277_v31  ;;  %vm510_vm2 = vcmp.gt.f32.partialorder %v1881_v4, 0.0  ;;  %v592_v45 = vadd.s32 112, %v1739_v34 }
  0x92   : > { %1284 = vpow2.f32 %v541_v30  ;;  %v982_v42 = vadd.f32 -1.0, %v1279_v38  ;;  %v593_v36 = vadd.s32 120, %v1739_v34  ;;  %vm624_vm3 = vcmp.lt.s32.totalorder %v608_v39, 300 }
  0x93   : > { %1286 = vpow2.f32 %v543_v32  ;;  %v571_v43 = vsel %vm507_vm11, %v1851_v50, %v981_v25  ;;  %vm625_vm4 = vcmp.lt.s32.totalorder %v609_v40, 300  ;;  %v610_v53 = vadd.s32 %v1751_v41, %v592_v45 }
  0x94   : > { %1086 = vmatpush3.bf16.msk.msra.mxu0 %vm1085_vm10, %v1084_v5  ;;  %v572_v44 = vsel %vm508_vm12, %v1859_v54, %v982_v42  ;;  %vm1093_vm5 = vmpackc.low %vm625_vm4, %vm624_vm3  ;;  %v611_v54 = vadd.s32 %v1751_v41, %v593_v36  ;;  %vm511_vm6 = vcmp.gt.f32.partialorder %v495_v9, 0.0  ;;  %vm512_vm7 = vcmp.gt.f32.partialorder %v496_v20, 0.0 }
  0x95   : > { %1087 = vmatprep.subr.bf16.mxu0 %v1468_v22  ;;  %v1281_v35 = vpop.eup %1280  ;;  %v1088_v37 = vpack.c.bf16 %v572_v44, %v571_v43  ;;  %vm626_vm8 = vcmp.lt.s32.totalorder %v610_v53, 300  ;;  %v1471_v41 = vmov 1.0   ;;  %vm761_vm11 = vcmask 7168  }
  0x96   : > { %v1283_v46 = vpop.eup %1282  ;;  %v983_v47 = vadd.f32 -1.0, %v1281_v35  ;;  %vm627_vm9 = vcmp.lt.s32.totalorder %v611_v54, 300  ;;  %v1472_v7 = vmov (!%p1007_p2), 0  }
  0x97   : > { %v984_v50 = vadd.f32 -1.0, %v1283_v46  ;;  %vm1097_vm10 = vmpackc.low %vm627_vm9, %vm626_vm8  ;;  %1288 = vset.pattern.permute.xlu0 (!%p1007_p2), %v1472_v7 }
  0x98   : > { %1090 = vmatpush3.bf16.msk.msra.mxu0 %vm1089_vm1, %v1088_v37  ;;  %v573_v51 = vsel %vm509_vm0, %v1877_v0, %v983_v47  ;;  %v684_v0 = vld [vmem:[%s1713_s22] sm:$0xff] }
  0x99   : > { %1091 = vmatprep.subr.bf16.mxu0 %v1468_v22  ;;  %v574_v52 = vsel %vm510_vm2, %v1881_v4, %v984_v50 }
  0x9a   : > { %v1092_v55 = vpack.c.bf16 %v574_v52, %v573_v51 }
  0x9c   : > { %v1285_v48 = vpop.eup %1284  ;;  %1094 = vmatpush3.bf16.msk.msra.mxu0 %vm1093_vm5, %v1092_v55 }
  0x9d   : > { %v1287_v56 = vpop.eup %1286  ;;  %1095 = vmatprep.subr.bf16.mxu0 %v1468_v22  ;;  %v985_v57 = vadd.f32 -1.0, %v1285_v48 }
  0x9e   : > { %v986_v49 = vadd.f32 -1.0, %v1287_v56 }
  0x9f   : > { %v575_v58 = vsel %vm511_vm6, %v495_v9, %v985_v57 }
  0xa0   : > { %v576_v59 = vsel %vm512_vm7, %v496_v20, %v986_v49 }
  0xa1   : > { %v1096_v60 = vpack.c.bf16 %v576_v59, %v575_v58 }
  0xa3   : > { %1098 = vmatpush3.bf16.msk.msra.mxu0 %vm1097_vm10, %v1096_v60 }
  0xa6   : > { %1065 = vmatmul.mubr.msk.f32.vlgmr.msra.gmra.mrb[0].mxu0 %vm681_vm13, %v1471_v41 }
 0x11d   : > { %v759_v62 = vpop.xlane.xlu0 %758 }
 0x11e   : > { %v760_v22 = vadd.f32 %v759_v62, %v757_v61 }
 0x120   : > { %762 = vst.msk [vmem:[#allocation2] sm:$0xff] %vm761_vm11, %v760_v22 }
 0x127   : > { %v768_v6 = vld [vmem:[#allocation2] sm:$0xff] (!%p1007_p2) }
 0x128   : > { %v769_v34 = vmax.f32 (!%p1007_p2), %v768_v6, 1.0 }
 0x12a   : > { %772 = vperm.xlu0 (!%p1007_p2), %1288, %v769_v34  }
 0x176   : > { %766 = sbr.rel (%p1007_p2) target bundleno = 440 (0x1b8), region = 96 }
 0x179   : > { %v751_v2 = vpop.f32.mrb[0].mxu0 }
 0x17a   : > { %v755_v3 = vadd.f32 %v751_v2, %v684_v0  ;;  %v1066_v4 = vpop.f32.mrb[1].mxu0 }
 0x17c   : > { %756 = vst [vmem:[%s1713_s22] sm:$0xff] %v755_v3 }
 0x183   : > { %v767_v10 = vld [vmem:[%s1713_s22] sm:$0xff] }
 0x1a9   : > { %v773_v8 = vpop.permute.xlu0 %772 }
 0x1aa   : > { %1289 = vrcp.f32 %v773_v8 }
 0x1b4   : > { %v1290_v11 = vpop.eup %1289 }
 0x1b5   : > { %v776_v12 = vmul.f32 %v1290_v11, %v767_v10 }
 0x1b7   : > { %777 = vst [vmem:[%s1713_s22] sm:$0xff] %v776_v12 }
 0x1b8 PF: > { %s1009_s20 = sshll.u32 %s1421_s21, 7  ;;  %s792_s8 = sshll.u32 %s1713_s22, 4  ;;  %s793_s8 = int_to_ptr.vmem [resolvable:$true] %s792_s8 }
 0x1b9   : > { %s1963_s6 = scalar_lea.hbm %s2023_s4, %s1009_s20  ;;  %s779_s25 = scalar_lea.sflag [#allocation5], %s411_s5 }
 0x1ba   : > { %s1291_s28 = scalar_lea.vmem %s793_s8, 128  ;;  %s1473_s14 = smov [#allocation4]  }
 0x1bb   : > { %p1292_p3 = scmp.ne.s32.totalorder %s793_s8, %s1291_s28  ;;  %s1295_s26 = sshll.u32 %s1473_s14, 4  ;;  %s1296_s26 = int_to_ptr.vmem [resolvable:$false] %s1295_s26 }
 0x1bc   : > { %s1297_s18 = scalar_lea.vmem %s1296_s26, 256  ;;  %p1298_p6 = scmp.lt.s32.totalorder %s793_s8, %s1296_s26 }
 0x1bd   : > { %p1293_p4 = pnand %p1292_p3, %p1571_p7  ;;  %p1299_p8 = scmp.lt.s32.totalorder %s1297_s18, %s1291_s28 }
 0x1bf   : > { %p1294_p5 = pneg %p1293_p4  ;;  %p1300_p9 = por %p1299_p8, %p1298_p6 }
 0x1c1   : > { %p1301_p10 = pnand %p1300_p9, %p1294_p5 }
 0x1c3   : > { %1304 = shalt.err (!%p1301_p10)
}
 0x1c4   : > { %s1305_s21 = scalar_lea.hbm %s1963_s6, 128  ;;  %s1309_s27 = scalar_lea.hbm %s2023_s4, 256 }
 0x1c5   : > { %p1306_p11 = scmp.ne.s32.totalorder %s1963_s6, %s1305_s21  ;;  %p1310_p1 = scmp.lt.u32.totalorder %s1963_s6, %s2023_s4 }
 0x1c6   : > { %p1311_p2 = scmp.lt.u32.totalorder %s1309_s27, %s1305_s21  ;;  %p1313_p4 = scmp.lt.u32.totalorder %s1305_s21, %s1963_s6 }
 0x1c7   : > { %p1307_p13 = pnand %p1306_p11, %p1571_p7 }
 0x1c8   : > { %p1312_p3 = por %p1311_p2, %p1310_p1 }
 0x1c9   : > { %p1308_p0 = pneg %p1307_p13 }
 0x1ca   : > { %p1314_p5 = por %p1313_p4, %p1312_p3 }
 0x1cc   : > { %p1315_p6 = pnand %p1314_p5, %p1308_p0 }
 0x1ce   : > { %1318 = shalt.err (!%p1315_p6)
}
 0x1cf   : > { %1099 = dma.vmem_to_hbm [thread:$0]  (%p1571_p7), %s793_s8, 128, %s1963_s6, %s779_s25  }
 0x1d0 PF: > { %p1105_p8 = scmp.ge.s32.totalorder %s1433_s24, 2  ;;  %s804_s23 = sand.u32 1, %s1397_s15  }
 0x1d1   : > { %s805_s29 = scalar_lea.sflag [#allocation5], %s804_s23 }
 0x1d2   : > { %p1102_p9 = pnand %p1105_p8, %p1579_p12 }
 0x1d4   : > { %1392 = dma.done.wait (!%p1102_p9), %s805_s29, 128  }
 0x1d5   : > { %1394 = vsyncadd (!%p1102_p9), %s805_s29, 4294967168  ;;  %s17_s24 = sadd.s32 1, %s1433_s24   ;;  %s2044_s20 = sld [smem:[#allocation7_spill]] }
 0x1d6   : > { %p14_p10 = scmp.ge.s32.totalorder %s17_s24, 8   ;;  %s2045_s21 = sld [smem:[#allocation8_spill]] }
 0x1d7   : > { %s2046_s22 = sld [smem:[#allocation9_spill]]  ;;  %s2047_s23 = sld [smem:[#allocation10_spill]] }
 0x1d8   : > { %s2048_s15 = smov %s1401_s16  ;;  %s2049_s16 = smov %s1405_s17 }
 0x1d9   : > { %s2050_s17 = smov %s1584_s11  ;;  %s2051_s18 = smov %s1413_s19 }
 0x1da   : > { %s2052_s19 = smov %s1587_s12  ;;  %16 = sbr.rel (!%p14_p10) target bundleno = 8 (0x8), region = 175 }
 0x1e1   :  { %810 = vsyncpa [#allocation5], 1 }
 0x1e2   :  { %812 = vsyncpa [#allocation5 + $0x1], 1 }

</bundles_post_ra>
